<compile_context>
chip_gen: v5e
topology: v5e:2x2
jax: 0.10.0
libtpu: 0.0.40
codegen_flags: <defaults>
</compile_context>

<pallas_src>
import functools

import jax
import jax.numpy as jnp
from jax.experimental import pallas as pl
from jax.experimental.pallas import tpu as pltpu


# -----------------------------------------------------------------------------
# Fixed-point quantizer: clamp(round(x * 2^frac), -2^(w-1), 2^(w-1)-1) * 2^-frac
# (multiply by the exact power-of-two reciprocal instead of dividing).
# NOTE: jnp.round is round-half-to-even; width=32 clamp bounds are not exactly
# representable in f32 - kernel and reference share both behaviours.
# -----------------------------------------------------------------------------
def fxp_quant(x, width, frac_width):
    scale = jnp.float32(2.0 ** frac_width)
    inv_scale = jnp.float32(2.0 ** (-frac_width))
    max_v = jnp.float32(2.0 ** (width - 1) - 1.0)
    min_v = jnp.float32(-(2.0 ** (width - 1)))
    return jnp.clip(jnp.round(x * scale), min_v, max_v) * inv_scale


DEFAULT_CFG = dict(
    data_width=32, data_frac_width=1,
    weight_q_width=16, weight_q_frac_width=1,
    weight_k_width=16, weight_k_frac_width=1,
    weight_v_width=16, weight_v_frac_width=1,
    weight_p_width=16, weight_p_frac_width=1,
    bias_q_width=16, bias_q_frac_width=1,
    bias_k_width=16, bias_k_frac_width=1,
    bias_v_width=16, bias_v_frac_width=1,
    bias_p_width=16, bias_p_frac_width=1,
    data_q_width=16, data_q_frac_width=1,
    data_k_width=16, data_k_frac_width=1,
    data_v_width=16, data_v_frac_width=1,
    data_s_width=16, data_s_frac_width=1,
    data_z_width=16, data_z_frac_width=1,
    out_width=32, out_frac_width=1,
)


# -----------------------------------------------------------------------------
# Pallas kernel: one grid step == Bt batch elements, all heads fused.
# Weights/biases arrive pre-quantized and pre-transposed from the wrapper.
# -----------------------------------------------------------------------------
def _msa_kernel(x_ref, wqkv_ref, bqkv_ref, wp_ref, bp_ref, o_ref,
                *, bt, num_heads, dh, cfg, fused_qkv_quant):
    N = x_ref.shape[1]
    D = num_heads * dh
    rows = bt * N

    # Activation quantized once per step (the only per-step quantization of inputs).
    xq = fxp_quant(x_ref[...].reshape(rows, D),
                   cfg["data_width"], cfg["data_frac_width"])          # (rows, D)

    # Fused QKV projection: one MXU matmul, contraction dim already leading.
    qkv = jnp.dot(xq, wqkv_ref[...],
                  preferred_element_type=jnp.float32) + bqkv_ref[...]   # (rows, 3D)
    if fused_qkv_quant:
        # data_q/k/v formats identical -> one quantization pass over the whole tile.
        qkv = fxp_quant(qkv, cfg["data_q_width"], cfg["data_q_frac_width"])

    # Per-head attention (static unrolled loop; S = Q K^T, Z = S V, fixed point,
    # no softmax in the HW helper).  Batch elements stay separate via the einsum
    # batch axis.  Lane slices at dh offsets remain; see TODO at top for dh<128.
    z_heads = []
    for h in range(num_heads):
        base = 3 * dh * h
        qh = qkv[:, base:base + dh]
        kh = qkv[:, base + dh:base + 2 * dh]
        vh = qkv[:, base + 2 * dh:base + 3 * dh]
        if not fused_qkv_quant:
            qh = fxp_quant(qh, cfg["data_q_width"], cfg["data_q_frac_width"])
            kh = fxp_quant(kh, cfg["data_k_width"], cfg["data_k_frac_width"])
            vh = fxp_quant(vh, cfg["data_v_width"], cfg["data_v_frac_width"])
        qh = qh.reshape(bt, N, dh)
        kh = kh.reshape(bt, N, dh)
        vh = vh.reshape(bt, N, dh)
        s = jnp.einsum("bnd,bmd->bnm", qh, kh, preferred_element_type=jnp.float32)
        s = fxp_quant(s, cfg["data_s_width"], cfg["data_s_frac_width"])
        z = jnp.einsum("bnm,bmd->bnd", s, vh, preferred_element_type=jnp.float32)
        z = fxp_quant(z, cfg["data_z_width"], cfg["data_z_frac_width"])
        z_heads.append(z)
    zcat = z_heads[0] if num_heads == 1 else jnp.concatenate(z_heads, axis=-1)  # (bt,N,D)

    # Output projection: ONE matmul over the full D (wp already (D_in, D_out)).
    # (QuantizedLinear's input re-quantization to the data_z format is idempotent
    #  here because the module wires the projection's data format to data_z.)
    out = jnp.dot(zcat.reshape(rows, D), wp_ref[...],
                  preferred_element_type=jnp.float32) + bp_ref[...]
    out = fxp_quant(out, cfg["out_width"], cfg["out_frac_width"])
    o_ref[...] = out.reshape(bt, N, D).astype(o_ref.dtype)


# -----------------------------------------------------------------------------
# Batch-tile picker: fill the MXU M dimension when possible; otherwise keep at
# least two grid steps so a v7x megacore gets balanced "parallel" work.
# -----------------------------------------------------------------------------
def _pick_batch_tile(B, N, min_rows=256, max_rows=1024):
    divisors = [d for d in range(1, B + 1) if B % d == 0]
    for d in divisors:                       # smallest tile that fills the MXU
        if min_rows <= d * N <= max_rows:
            return d
    cands = [d for d in divisors if B // d >= 2 and d * N <= max_rows]
    if cands:                                # keep >= 2 grid steps, pack the rest
        return max(cands)
    cands = [d for d in divisors if d * N <= max_rows]
    return max(cands) if cands else 1


# -----------------------------------------------------------------------------
# Wrapper: all parameter quantization / regrouping / transposition happens here,
# once, outside the kernel (free layout plumbing + B-fold VPU saving).
# -----------------------------------------------------------------------------
def quantized_msa_pallas(x, wqkv, bqkv, wp, bp, num_heads, cfg=DEFAULT_CFG,
                         batch_tile=None):
    f32 = jnp.float32
    B, N, D = x.shape
    assert D % num_heads == 0
    dh = D // num_heads
    bt = batch_tile if batch_tile is not None else _pick_batch_tile(B, N)
    assert B % bt == 0

    # Module layout: wqkv.reshape(H, 3*dh, D)[h] rows are [Wq_h; Wk_h; Wv_h].
    w4 = wqkv.astype(f32).reshape(num_heads, 3, dh, D)
    wq = fxp_quant(w4[:, 0], cfg["weight_q_width"], cfg["weight_q_frac_width"])
    wk = fxp_quant(w4[:, 1], cfg["weight_k_width"], cfg["weight_k_frac_width"])
    wv = fxp_quant(w4[:, 2], cfg["weight_v_width"], cfg["weight_v_frac_width"])
    # Head-major fused weight, contraction dim LEADING: (D, 3D), columns
    # ordered [h0: q|k|v, h1: q|k|v, ...].
    w_all = jnp.stack([wq, wk, wv], axis=1).reshape(3 * D, D).transpose(1, 0)

    b3 = bqkv.astype(f32).reshape(num_heads, 3, dh)
    bq = fxp_quant(b3[:, 0], cfg["bias_q_width"], cfg["bias_q_frac_width"])
    bk = fxp_quant(b3[:, 1], cfg["bias_k_width"], cfg["bias_k_frac_width"])
    bv = fxp_quant(b3[:, 2], cfg["bias_v_width"], cfg["bias_v_frac_width"])
    b_all = jnp.stack([bq, bk, bv], axis=1).reshape(1, 3 * D)

    wp_t = fxp_quant(wp.astype(f32),
                     cfg["weight_p_width"], cfg["weight_p_frac_width"]).transpose(1, 0)
    bp_q = fxp_quant(bp.astype(f32),
                     cfg["bias_p_width"], cfg["bias_p_frac_width"]).reshape(1, D)

    fused_qkv_quant = (
        (cfg["data_q_width"], cfg["data_q_frac_width"])
        == (cfg["data_k_width"], cfg["data_k_frac_width"])
        == (cfg["data_v_width"], cfg["data_v_frac_width"]))

    kernel = functools.partial(_msa_kernel, bt=bt, num_heads=num_heads, dh=dh,
                               cfg=cfg, fused_qkv_quant=fused_qkv_quant)

    # Explicit scoped-VMEM budget: double-buffered blocks + intermediate headroom.
    block_f32_elems = 2 * bt * N * D + 3 * D * D + 3 * D + D * D + D
    vmem_limit = int(min(max(6 * 4 * block_f32_elems, 4 * 1024 * 1024),
                         64 * 1024 * 1024))

    grid_spec = pltpu.PrefetchScalarGridSpec(
        num_scalar_prefetch=0,
        grid=(B // bt,),
        in_specs=[
            pl.BlockSpec((bt, N, D), lambda g: (g, 0, 0)),   # activations (packed batch)
            # Grid-invariant parameter blocks (constant index_map => fetched once).
            pl.BlockSpec((D, 3 * D), lambda g: (0, 0)),      # fused QKV weight (pre-quant, pre-T)
            pl.BlockSpec((1, 3 * D), lambda g: (0, 0)),      # fused QKV bias
            pl.BlockSpec((D, D), lambda g: (0, 0)),          # projection weight (pre-quant, pre-T)
            pl.BlockSpec((1, D), lambda g: (0, 0)),          # projection bias
        ],
        out_specs=pl.BlockSpec((bt, N, D), lambda g: (g, 0, 0)),
    )

    return pl.pallas_call(
        kernel,
        out_shape=jax.ShapeDtypeStruct((B, N, D), f32),
        grid_spec=grid_spec,
        compiler_params=pltpu.CompilerParams(
            dimension_semantics=("parallel",),
            vmem_limit_bytes=vmem_limit),
    )(x.astype(f32), w_all, b_all, wp_t, bp_q)


# -----------------------------------------------------------------------------
# Pure-JAX reference (mirrors the PyTorch module structure head-by-head).
# -----------------------------------------------------------------------------
def quantized_msa_reference(x, wqkv, bqkv, wp, bp, num_heads, cfg=DEFAULT_CFG):
    B, N, D = x.shape
    dh = D // num_heads
    wqkv_h = wqkv.reshape(num_heads, 3 * dh, D)
    bqkv_h = bqkv.reshape(num_heads, 3 * dh)
    xq = fxp_quant(x.astype(jnp.float32), cfg["data_width"], cfg["data_frac_width"])

    heads = []
    for h in range(num_heads):
        w, b = wqkv_h[h], bqkv_h[h]
        wq = fxp_quant(w[0 * dh:1 * dh], cfg["weight_q_width"], cfg["weight_q_frac_width"])
        wk = fxp_quant(w[1 * dh:2 * dh], cfg["weight_k_width"], cfg["weight_k_frac_width"])
        wv = fxp_quant(w[2 * dh:3 * dh], cfg["weight_v_width"], cfg["weight_v_frac_width"])
        bq = fxp_quant(b[0 * dh:1 * dh], cfg["bias_q_width"], cfg["bias_q_frac_width"])
        bk = fxp_quant(b[1 * dh:2 * dh], cfg["bias_k_width"], cfg["bias_k_frac_width"])
        bv = fxp_quant(b[2 * dh:3 * dh], cfg["bias_v_width"], cfg["bias_v_frac_width"])
        q = fxp_quant(xq @ wq.T + bq, cfg["data_q_width"], cfg["data_q_frac_width"])
        k = fxp_quant(xq @ wk.T + bk, cfg["data_k_width"], cfg["data_k_frac_width"])
        v = fxp_quant(xq @ wv.T + bv, cfg["data_v_width"], cfg["data_v_frac_width"])
        s = fxp_quant(jnp.einsum("bqd,bkd->bqk", q, k),
                      cfg["data_s_width"], cfg["data_s_frac_width"])
        z = fxp_quant(jnp.einsum("bqk,bkd->bqd", s, v),
                      cfg["data_z_width"], cfg["data_z_frac_width"])
        heads.append(z)

    result = jnp.concatenate(heads, axis=2)                             # (B, N, D)
    rq = fxp_quant(result, cfg["data_z_width"], cfg["data_z_frac_width"])
    wpq = fxp_quant(wp, cfg["weight_p_width"], cfg["weight_p_frac_width"])
    bpq = fxp_quant(bp, cfg["bias_p_width"], cfg["bias_p_frac_width"])
    out = rq @ wpq.T + bpq
    return fxp_quant(out, cfg["out_width"], cfg["out_frac_width"])


if __name__ == "__main__":
    # Small, module-consistent shapes; B=4 gives a multi-step "parallel" grid.
    # Scales are chosen so every matmul operand is exactly bf16-representable,
    # keeping kernel and reference bit-identical regardless of MXU f32 pass mode.
    B, N, dim, num_heads = 4, 8, 32, 4

    key = jax.random.PRNGKey(0)
    kx, kw, kb, kwp, kbp = jax.random.split(key, 5)
    x = jax.random.normal(kx, (B, N, dim), dtype=jnp.float32)
    wqkv = jax.random.normal(kw, (3 * dim, dim), dtype=jnp.float32) * 0.2
    bqkv = jax.random.normal(kb, (3 * dim,), dtype=jnp.float32) * 0.5
    wp = jax.random.normal(kwp, (dim, dim), dtype=jnp.float32) * 0.2
    bp = jax.random.normal(kbp, (dim,), dtype=jnp.float32) * 0.5

    out = quantized_msa_pallas(x, wqkv, bqkv, wp, bp, num_heads)
    out = jax.block_until_ready(out)

    ref = quantized_msa_reference(x, wqkv, bqkv, wp, bp, num_heads)
    assert out.shape == (B, N, dim)
    max_diff = float(jnp.max(jnp.abs(out - ref)))
    assert jnp.allclose(out, ref, atol=1e-4, rtol=1e-4), f"max abs diff = {max_diff}"

    print("KERNEL_OK")
</pallas_src>

<mosaic_0001>
module attributes {stable_mosaic.version = 11 : i64} {
  func.func @_msa_kernel(%arg0: i32, %arg1: memref<2x8x32xf32, #tpu.memory_space<vmem>>, %arg2: memref<32x96xf32, #tpu.memory_space<vmem>>, %arg3: memref<1x96xf32, #tpu.memory_space<vmem>>, %arg4: memref<32x32xf32, #tpu.memory_space<vmem>>, %arg5: memref<1x32xf32, #tpu.memory_space<vmem>>, %arg6: memref<2x8x32xf32, #tpu.memory_space<vmem>>) attributes {dimension_semantics = [#tpu.dimension_semantics<parallel>], iteration_bounds = array<i64: 2>, scalar_prefetch = 0 : i64, scratch_operands = 0 : i64, tpu.core_type = #tpu.core_type<tc>, window_params = [{transform_indices = @transform_0, window_bounds = array<i64: 2, 8, 32>}, {pipeline_mode = #tpu.pipeline_mode<synchronous>, transform_indices = @transform_1, window_bounds = array<i64: 32, 96>}, {pipeline_mode = #tpu.pipeline_mode<synchronous>, transform_indices = @transform_2, window_bounds = array<i64: 1, 96>}, {pipeline_mode = #tpu.pipeline_mode<synchronous>, transform_indices = @transform_3, window_bounds = array<i64: 32, 32>}, {pipeline_mode = #tpu.pipeline_mode<synchronous>, transform_indices = @transform_4, window_bounds = array<i64: 1, 32>}, {transform_indices = @transform_5, window_bounds = array<i64: 2, 8, 32>}]} {
    %c0 = arith.constant 0 : index
    %c0_0 = arith.constant 0 : index
    %c0_1 = arith.constant 0 : index
    %0 = vector.load %arg1[%c0, %c0_0, %c0_1] : memref<2x8x32xf32, #tpu.memory_space<vmem>>, vector<2x8x32xf32>
    %1 = vector.shape_cast %0 : vector<2x8x32xf32> to vector<16x32xf32>
    %cst = arith.constant 2.000000e+00 : f32
    %2 = vector.broadcast %cst : f32 to vector<16x32xf32>
    %3 = arith.mulf %1, %2 : vector<16x32xf32>
    %4 = math.roundeven %3 : vector<16x32xf32>
    %cst_2 = arith.constant -2.14748365E+9 : f32
    %cst_3 = arith.constant 2.14748365E+9 : f32
    %5 = vector.broadcast %cst_2 : f32 to vector<16x32xf32>
    %6 = arith.maximumf %5, %4 : vector<16x32xf32>
    %7 = vector.broadcast %cst_3 : f32 to vector<16x32xf32>
    %8 = arith.minimumf %7, %6 : vector<16x32xf32>
    %cst_4 = arith.constant 5.000000e-01 : f32
    %9 = vector.broadcast %cst_4 : f32 to vector<16x32xf32>
    %10 = arith.mulf %8, %9 : vector<16x32xf32>
    %c0_5 = arith.constant 0 : index
    %c0_6 = arith.constant 0 : index
    %11 = vector.load %arg2[%c0_5, %c0_6] : memref<32x96xf32, #tpu.memory_space<vmem>>, vector<32x96xf32>
    %cst_7 = arith.constant dense<0.000000e+00> : vector<16x96xf32>
    %12 = tpu.matmul %10, %11, %cst_7 {dimension_numbers = #tpu.dot_dimension_numbers<[1], [0], [0], [1], [0, 0, 1, 1], [], []>} : vector<16x32xf32>, vector<32x96xf32>, vector<16x96xf32> -> vector<16x96xf32>
    %c0_8 = arith.constant 0 : index
    %c0_9 = arith.constant 0 : index
    %13 = vector.load %arg3[%c0_8, %c0_9] : memref<1x96xf32, #tpu.memory_space<vmem>>, vector<1x96xf32>
    %14 = vector.broadcast %13 : vector<1x96xf32> to vector<16x96xf32>
    %15 = arith.addf %12, %14 : vector<16x96xf32>
    %cst_10 = arith.constant 2.000000e+00 : f32
    %16 = vector.broadcast %cst_10 : f32 to vector<16x96xf32>
    %17 = arith.mulf %15, %16 : vector<16x96xf32>
    %18 = math.roundeven %17 : vector<16x96xf32>
    %cst_11 = arith.constant -3.276800e+04 : f32
    %cst_12 = arith.constant 3.276700e+04 : f32
    %19 = vector.broadcast %cst_11 : f32 to vector<16x96xf32>
    %20 = arith.maximumf %19, %18 : vector<16x96xf32>
    %21 = vector.broadcast %cst_12 : f32 to vector<16x96xf32>
    %22 = arith.minimumf %21, %20 : vector<16x96xf32>
    %cst_13 = arith.constant 5.000000e-01 : f32
    %23 = vector.broadcast %cst_13 : f32 to vector<16x96xf32>
    %24 = arith.mulf %22, %23 : vector<16x96xf32>
    %25 = vector.extract_strided_slice %24 {offsets = [0, 0], sizes = [16, 8], strides = [1, 1]} : vector<16x96xf32> to vector<16x8xf32>
    %26 = vector.extract_strided_slice %24 {offsets = [0, 8], sizes = [16, 8], strides = [1, 1]} : vector<16x96xf32> to vector<16x8xf32>
    %27 = vector.extract_strided_slice %24 {offsets = [0, 16], sizes = [16, 8], strides = [1, 1]} : vector<16x96xf32> to vector<16x8xf32>
    %28 = vector.shape_cast %25 : vector<16x8xf32> to vector<2x8x8xf32>
    %29 = vector.shape_cast %26 : vector<16x8xf32> to vector<2x8x8xf32>
    %30 = vector.shape_cast %27 : vector<16x8xf32> to vector<2x8x8xf32>
    "tpu.trace_start"() <{level = 10 : i32, message = "bnd,bmd->bnm"}> : () -> ()
    %cst_14 = arith.constant dense<0.000000e+00> : vector<2x8x8xf32>
    %31 = tpu.matmul %28, %29, %cst_14 {dimension_numbers = #tpu.dot_dimension_numbers<[2], [2], [1], [1], [0, 0, 0, 1, 1, 1], [0], [0]>} : vector<2x8x8xf32>, vector<2x8x8xf32>, vector<2x8x8xf32> -> vector<2x8x8xf32>
    "tpu.trace_stop"() : () -> ()
    %cst_15 = arith.constant 2.000000e+00 : f32
    %32 = vector.broadcast %cst_15 : f32 to vector<2x8x8xf32>
    %33 = arith.mulf %31, %32 : vector<2x8x8xf32>
    %34 = math.roundeven %33 : vector<2x8x8xf32>
    %cst_16 = arith.constant -3.276800e+04 : f32
    %cst_17 = arith.constant 3.276700e+04 : f32
    %35 = vector.broadcast %cst_16 : f32 to vector<2x8x8xf32>
    %36 = arith.maximumf %35, %34 : vector<2x8x8xf32>
    %37 = vector.broadcast %cst_17 : f32 to vector<2x8x8xf32>
    %38 = arith.minimumf %37, %36 : vector<2x8x8xf32>
    %cst_18 = arith.constant 5.000000e-01 : f32
    %39 = vector.broadcast %cst_18 : f32 to vector<2x8x8xf32>
    %40 = arith.mulf %38, %39 : vector<2x8x8xf32>
    "tpu.trace_start"() <{level = 10 : i32, message = "bnm,bmd->bnd"}> : () -> ()
    %cst_19 = arith.constant dense<0.000000e+00> : vector<2x8x8xf32>
    %41 = tpu.matmul %40, %30, %cst_19 {dimension_numbers = #tpu.dot_dimension_numbers<[2], [1], [1], [2], [0, 0, 0, 1, 1, 2], [0], [0]>} : vector<2x8x8xf32>, vector<2x8x8xf32>, vector<2x8x8xf32> -> vector<2x8x8xf32>
    "tpu.trace_stop"() : () -> ()
    %cst_20 = arith.constant 2.000000e+00 : f32
    %42 = vector.broadcast %cst_20 : f32 to vector<2x8x8xf32>
    %43 = arith.mulf %41, %42 : vector<2x8x8xf32>
    %44 = math.roundeven %43 : vector<2x8x8xf32>
    %cst_21 = arith.constant -3.276800e+04 : f32
    %cst_22 = arith.constant 3.276700e+04 : f32
    %45 = vector.broadcast %cst_21 : f32 to vector<2x8x8xf32>
    %46 = arith.maximumf %45, %44 : vector<2x8x8xf32>
    %47 = vector.broadcast %cst_22 : f32 to vector<2x8x8xf32>
    %48 = arith.minimumf %47, %46 : vector<2x8x8xf32>
    %cst_23 = arith.constant 5.000000e-01 : f32
    %49 = vector.broadcast %cst_23 : f32 to vector<2x8x8xf32>
    %50 = arith.mulf %48, %49 : vector<2x8x8xf32>
    %51 = vector.extract_strided_slice %24 {offsets = [0, 24], sizes = [16, 8], strides = [1, 1]} : vector<16x96xf32> to vector<16x8xf32>
    %52 = vector.extract_strided_slice %24 {offsets = [0, 32], sizes = [16, 8], strides = [1, 1]} : vector<16x96xf32> to vector<16x8xf32>
    %53 = vector.extract_strided_slice %24 {offsets = [0, 40], sizes = [16, 8], strides = [1, 1]} : vector<16x96xf32> to vector<16x8xf32>
    %54 = vector.shape_cast %51 : vector<16x8xf32> to vector<2x8x8xf32>
    %55 = vector.shape_cast %52 : vector<16x8xf32> to vector<2x8x8xf32>
    %56 = vector.shape_cast %53 : vector<16x8xf32> to vector<2x8x8xf32>
    "tpu.trace_start"() <{level = 10 : i32, message = "bnd,bmd->bnm"}> : () -> ()
    %cst_24 = arith.constant dense<0.000000e+00> : vector<2x8x8xf32>
    %57 = tpu.matmul %54, %55, %cst_24 {dimension_numbers = #tpu.dot_dimension_numbers<[2], [2], [1], [1], [0, 0, 0, 1, 1, 1], [0], [0]>} : vector<2x8x8xf32>, vector<2x8x8xf32>, vector<2x8x8xf32> -> vector<2x8x8xf32>
    "tpu.trace_stop"() : () -> ()
    %cst_25 = arith.constant 2.000000e+00 : f32
    %58 = vector.broadcast %cst_25 : f32 to vector<2x8x8xf32>
    %59 = arith.mulf %57, %58 : vector<2x8x8xf32>
    %60 = math.roundeven %59 : vector<2x8x8xf32>
    %cst_26 = arith.constant -3.276800e+04 : f32
    %cst_27 = arith.constant 3.276700e+04 : f32
    %61 = vector.broadcast %cst_26 : f32 to vector<2x8x8xf32>
    %62 = arith.maximumf %61, %60 : vector<2x8x8xf32>
    %63 = vector.broadcast %cst_27 : f32 to vector<2x8x8xf32>
    %64 = arith.minimumf %63, %62 : vector<2x8x8xf32>
    %cst_28 = arith.constant 5.000000e-01 : f32
    %65 = vector.broadcast %cst_28 : f32 to vector<2x8x8xf32>
    %66 = arith.mulf %64, %65 : vector<2x8x8xf32>
    "tpu.trace_start"() <{level = 10 : i32, message = "bnm,bmd->bnd"}> : () -> ()
    %cst_29 = arith.constant dense<0.000000e+00> : vector<2x8x8xf32>
    %67 = tpu.matmul %66, %56, %cst_29 {dimension_numbers = #tpu.dot_dimension_numbers<[2], [1], [1], [2], [0, 0, 0, 1, 1, 2], [0], [0]>} : vector<2x8x8xf32>, vector<2x8x8xf32>, vector<2x8x8xf32> -> vector<2x8x8xf32>
    "tpu.trace_stop"() : () -> ()
    %cst_30 = arith.constant 2.000000e+00 : f32
    %68 = vector.broadcast %cst_30 : f32 to vector<2x8x8xf32>
    %69 = arith.mulf %67, %68 : vector<2x8x8xf32>
    %70 = math.roundeven %69 : vector<2x8x8xf32>
    %cst_31 = arith.constant -3.276800e+04 : f32
    %cst_32 = arith.constant 3.276700e+04 : f32
    %71 = vector.broadcast %cst_31 : f32 to vector<2x8x8xf32>
    %72 = arith.maximumf %71, %70 : vector<2x8x8xf32>
    %73 = vector.broadcast %cst_32 : f32 to vector<2x8x8xf32>
    %74 = arith.minimumf %73, %72 : vector<2x8x8xf32>
    %cst_33 = arith.constant 5.000000e-01 : f32
    %75 = vector.broadcast %cst_33 : f32 to vector<2x8x8xf32>
    %76 = arith.mulf %74, %75 : vector<2x8x8xf32>
    %77 = vector.extract_strided_slice %24 {offsets = [0, 48], sizes = [16, 8], strides = [1, 1]} : vector<16x96xf32> to vector<16x8xf32>
    %78 = vector.extract_strided_slice %24 {offsets = [0, 56], sizes = [16, 8], strides = [1, 1]} : vector<16x96xf32> to vector<16x8xf32>
    %79 = vector.extract_strided_slice %24 {offsets = [0, 64], sizes = [16, 8], strides = [1, 1]} : vector<16x96xf32> to vector<16x8xf32>
    %80 = vector.shape_cast %77 : vector<16x8xf32> to vector<2x8x8xf32>
    %81 = vector.shape_cast %78 : vector<16x8xf32> to vector<2x8x8xf32>
    %82 = vector.shape_cast %79 : vector<16x8xf32> to vector<2x8x8xf32>
    "tpu.trace_start"() <{level = 10 : i32, message = "bnd,bmd->bnm"}> : () -> ()
    %cst_34 = arith.constant dense<0.000000e+00> : vector<2x8x8xf32>
    %83 = tpu.matmul %80, %81, %cst_34 {dimension_numbers = #tpu.dot_dimension_numbers<[2], [2], [1], [1], [0, 0, 0, 1, 1, 1], [0], [0]>} : vector<2x8x8xf32>, vector<2x8x8xf32>, vector<2x8x8xf32> -> vector<2x8x8xf32>
    "tpu.trace_stop"() : () -> ()
    %cst_35 = arith.constant 2.000000e+00 : f32
    %84 = vector.broadcast %cst_35 : f32 to vector<2x8x8xf32>
    %85 = arith.mulf %83, %84 : vector<2x8x8xf32>
    %86 = math.roundeven %85 : vector<2x8x8xf32>
    %cst_36 = arith.constant -3.276800e+04 : f32
    %cst_37 = arith.constant 3.276700e+04 : f32
    %87 = vector.broadcast %cst_36 : f32 to vector<2x8x8xf32>
    %88 = arith.maximumf %87, %86 : vector<2x8x8xf32>
    %89 = vector.broadcast %cst_37 : f32 to vector<2x8x8xf32>
    %90 = arith.minimumf %89, %88 : vector<2x8x8xf32>
    %cst_38 = arith.constant 5.000000e-01 : f32
    %91 = vector.broadcast %cst_38 : f32 to vector<2x8x8xf32>
    %92 = arith.mulf %90, %91 : vector<2x8x8xf32>
    "tpu.trace_start"() <{level = 10 : i32, message = "bnm,bmd->bnd"}> : () -> ()
    %cst_39 = arith.constant dense<0.000000e+00> : vector<2x8x8xf32>
    %93 = tpu.matmul %92, %82, %cst_39 {dimension_numbers = #tpu.dot_dimension_numbers<[2], [1], [1], [2], [0, 0, 0, 1, 1, 2], [0], [0]>} : vector<2x8x8xf32>, vector<2x8x8xf32>, vector<2x8x8xf32> -> vector<2x8x8xf32>
    "tpu.trace_stop"() : () -> ()
    %cst_40 = arith.constant 2.000000e+00 : f32
    %94 = vector.broadcast %cst_40 : f32 to vector<2x8x8xf32>
    %95 = arith.mulf %93, %94 : vector<2x8x8xf32>
    %96 = math.roundeven %95 : vector<2x8x8xf32>
    %cst_41 = arith.constant -3.276800e+04 : f32
    %cst_42 = arith.constant 3.276700e+04 : f32
    %97 = vector.broadcast %cst_41 : f32 to vector<2x8x8xf32>
    %98 = arith.maximumf %97, %96 : vector<2x8x8xf32>
    %99 = vector.broadcast %cst_42 : f32 to vector<2x8x8xf32>
    %100 = arith.minimumf %99, %98 : vector<2x8x8xf32>
    %cst_43 = arith.constant 5.000000e-01 : f32
    %101 = vector.broadcast %cst_43 : f32 to vector<2x8x8xf32>
    %102 = arith.mulf %100, %101 : vector<2x8x8xf32>
    %103 = vector.extract_strided_slice %24 {offsets = [0, 72], sizes = [16, 8], strides = [1, 1]} : vector<16x96xf32> to vector<16x8xf32>
    %104 = vector.extract_strided_slice %24 {offsets = [0, 80], sizes = [16, 8], strides = [1, 1]} : vector<16x96xf32> to vector<16x8xf32>
    %105 = vector.extract_strided_slice %24 {offsets = [0, 88], sizes = [16, 8], strides = [1, 1]} : vector<16x96xf32> to vector<16x8xf32>
    %106 = vector.shape_cast %103 : vector<16x8xf32> to vector<2x8x8xf32>
    %107 = vector.shape_cast %104 : vector<16x8xf32> to vector<2x8x8xf32>
    %108 = vector.shape_cast %105 : vector<16x8xf32> to vector<2x8x8xf32>
    "tpu.trace_start"() <{level = 10 : i32, message = "bnd,bmd->bnm"}> : () -> ()
    %cst_44 = arith.constant dense<0.000000e+00> : vector<2x8x8xf32>
    %109 = tpu.matmul %106, %107, %cst_44 {dimension_numbers = #tpu.dot_dimension_numbers<[2], [2], [1], [1], [0, 0, 0, 1, 1, 1], [0], [0]>} : vector<2x8x8xf32>, vector<2x8x8xf32>, vector<2x8x8xf32> -> vector<2x8x8xf32>
    "tpu.trace_stop"() : () -> ()
    %cst_45 = arith.constant 2.000000e+00 : f32
    %110 = vector.broadcast %cst_45 : f32 to vector<2x8x8xf32>
    %111 = arith.mulf %109, %110 : vector<2x8x8xf32>
    %112 = math.roundeven %111 : vector<2x8x8xf32>
    %cst_46 = arith.constant -3.276800e+04 : f32
    %cst_47 = arith.constant 3.276700e+04 : f32
    %113 = vector.broadcast %cst_46 : f32 to vector<2x8x8xf32>
    %114 = arith.maximumf %113, %112 : vector<2x8x8xf32>
    %115 = vector.broadcast %cst_47 : f32 to vector<2x8x8xf32>
    %116 = arith.minimumf %115, %114 : vector<2x8x8xf32>
    %cst_48 = arith.constant 5.000000e-01 : f32
    %117 = vector.broadcast %cst_48 : f32 to vector<2x8x8xf32>
    %118 = arith.mulf %116, %117 : vector<2x8x8xf32>
    "tpu.trace_start"() <{level = 10 : i32, message = "bnm,bmd->bnd"}> : () -> ()
    %cst_49 = arith.constant dense<0.000000e+00> : vector<2x8x8xf32>
    %119 = tpu.matmul %118, %108, %cst_49 {dimension_numbers = #tpu.dot_dimension_numbers<[2], [1], [1], [2], [0, 0, 0, 1, 1, 2], [0], [0]>} : vector<2x8x8xf32>, vector<2x8x8xf32>, vector<2x8x8xf32> -> vector<2x8x8xf32>
    "tpu.trace_stop"() : () -> ()
    %cst_50 = arith.constant 2.000000e+00 : f32
    %120 = vector.broadcast %cst_50 : f32 to vector<2x8x8xf32>
    %121 = arith.mulf %119, %120 : vector<2x8x8xf32>
    %122 = math.roundeven %121 : vector<2x8x8xf32>
    %cst_51 = arith.constant -3.276800e+04 : f32
    %cst_52 = arith.constant 3.276700e+04 : f32
    %123 = vector.broadcast %cst_51 : f32 to vector<2x8x8xf32>
    %124 = arith.maximumf %123, %122 : vector<2x8x8xf32>
    %125 = vector.broadcast %cst_52 : f32 to vector<2x8x8xf32>
    %126 = arith.minimumf %125, %124 : vector<2x8x8xf32>
    %cst_53 = arith.constant 5.000000e-01 : f32
    %127 = vector.broadcast %cst_53 : f32 to vector<2x8x8xf32>
    %128 = arith.mulf %126, %127 : vector<2x8x8xf32>
    %129 = tpu.concatenate %50, %76, %102, %128 in 2 : vector<2x8x8xf32>, vector<2x8x8xf32>, vector<2x8x8xf32>, vector<2x8x8xf32> -> vector<2x8x32xf32>
    %130 = vector.shape_cast %129 : vector<2x8x32xf32> to vector<16x32xf32>
    %c0_54 = arith.constant 0 : index
    %c0_55 = arith.constant 0 : index
    %131 = vector.load %arg4[%c0_54, %c0_55] : memref<32x32xf32, #tpu.memory_space<vmem>>, vector<32x32xf32>
    %cst_56 = arith.constant dense<0.000000e+00> : vector<16x32xf32>
    %132 = tpu.matmul %130, %131, %cst_56 {dimension_numbers = #tpu.dot_dimension_numbers<[1], [0], [0], [1], [0, 0, 1, 1], [], []>} : vector<16x32xf32>, vector<32x32xf32>, vector<16x32xf32> -> vector<16x32xf32>
    %c0_57 = arith.constant 0 : index
    %c0_58 = arith.constant 0 : index
    %133 = vector.load %arg5[%c0_57, %c0_58] : memref<1x32xf32, #tpu.memory_space<vmem>>, vector<1x32xf32>
    %134 = vector.broadcast %133 : vector<1x32xf32> to vector<16x32xf32>
    %135 = arith.addf %132, %134 : vector<16x32xf32>
    %cst_59 = arith.constant 2.000000e+00 : f32
    %136 = vector.broadcast %cst_59 : f32 to vector<16x32xf32>
    %137 = arith.mulf %135, %136 : vector<16x32xf32>
    %138 = math.roundeven %137 : vector<16x32xf32>
    %cst_60 = arith.constant -2.14748365E+9 : f32
    %cst_61 = arith.constant 2.14748365E+9 : f32
    %139 = vector.broadcast %cst_60 : f32 to vector<16x32xf32>
    %140 = arith.maximumf %139, %138 : vector<16x32xf32>
    %141 = vector.broadcast %cst_61 : f32 to vector<16x32xf32>
    %142 = arith.minimumf %141, %140 : vector<16x32xf32>
    %cst_62 = arith.constant 5.000000e-01 : f32
    %143 = vector.broadcast %cst_62 : f32 to vector<16x32xf32>
    %144 = arith.mulf %142, %143 : vector<16x32xf32>
    %145 = vector.shape_cast %144 : vector<16x32xf32> to vector<2x8x32xf32>
    %c0_63 = arith.constant 0 : index
    %c0_64 = arith.constant 0 : index
    %c0_65 = arith.constant 0 : index
    %146 = vector.load %arg6[%c0_63, %c0_64, %c0_65] : memref<2x8x32xf32, #tpu.memory_space<vmem>>, vector<2x8x32xf32>
    tpu.vector_store %arg6[%c0_63, %c0_64, %c0_65], %145 {strides = array<i32>} : memref<2x8x32xf32, #tpu.memory_space<vmem>>, vector<2x8x32xf32>,
    return
  }
  func.func @transform_0(%arg0: i32) -> (i32, i32, i32) {
    %c0_i32 = arith.constant 0 : i32
    %c0_i32_0 = arith.constant 0 : i32
    %c0_i32_1 = arith.constant 0 : i32
    return %arg0, %c0_i32, %c0_i32_0 : i32, i32, i32
  }
  func.func @transform_1(%arg0: i32) -> (i32, i32) {
    %c0_i32 = arith.constant 0 : i32
    %c0_i32_0 = arith.constant 0 : i32
    %c0_i32_1 = arith.constant 0 : i32
    return %c0_i32, %c0_i32_0 : i32, i32
  }
  func.func @transform_2(%arg0: i32) -> (i32, i32) {
    %c0_i32 = arith.constant 0 : i32
    %c0_i32_0 = arith.constant 0 : i32
    %c0_i32_1 = arith.constant 0 : i32
    return %c0_i32, %c0_i32_0 : i32, i32
  }
  func.func @transform_3(%arg0: i32) -> (i32, i32) {
    %c0_i32 = arith.constant 0 : i32
    %c0_i32_0 = arith.constant 0 : i32
    %c0_i32_1 = arith.constant 0 : i32
    return %c0_i32, %c0_i32_0 : i32, i32
  }
  func.func @transform_4(%arg0: i32) -> (i32, i32) {
    %c0_i32 = arith.constant 0 : i32
    %c0_i32_0 = arith.constant 0 : i32
    %c0_i32_1 = arith.constant 0 : i32
    return %c0_i32, %c0_i32_0 : i32, i32
  }
  func.func @transform_5(%arg0: i32) -> (i32, i32, i32) {
    %c0_i32 = arith.constant 0 : i32
    %c0_i32_0 = arith.constant 0 : i32
    %c0_i32_1 = arith.constant 0 : i32
    return %arg0, %c0_i32, %c0_i32_0 : i32, i32, i32
  }
}

</mosaic_0001>

<bundles_post_ra>
// kernel: tpu_custom_call.1
= control target key start
LH: loop header
LB: loop body
LE: loop exit
PB: predicated region body
PF: predicated region fallthrough
CT: control target
= control target key end

     0   :  { %10 = vsyncpa [#allocation3], 0  ;;  %s1766_s0 = inlined_call_operand.hbm [shape: f32[4,8,32], index: 0, kind: input, shape index: {}]   ;;  %s1767_s1 = inlined_call_operand.hbm [shape: f32[32,96], index: 1, kind: input, shape index: {}]   ;;  %s1768_s2 = inlined_call_operand.vmem [shape: f32[1,96], index: 2, kind: input, shape index: {}]   ;;  %s1769_s3 = inlined_call_operand.hbm [shape: f32[32,32], index: 3, kind: input, shape index: {}]   ;;  %s1770_s4 = inlined_call_operand.vmem [shape: f32[1,32], index: 4, kind: input, shape index: {}]   ;;  %s1771_s5 = inlined_call_operand.hbm [shape: f32[4,8,32], index: 5, kind: output, shape index: {}]  }
   0x1   :  { %12 = vsyncpa [#allocation3 + $0x1], 0 }
   0x2   :  { %13 = vsyncpa [#allocation6], 0 }
   0x3   :  { %14 = vsyncpa [#allocation4], 0 }
   0x4   :  { %16 = vsyncpa [#allocation4 + $0x1], 0  ;;  %s1565_s18 = smov 0   ;;  %s1567_s19 = smov 0  }
   0x5   :  { %s1569_s20 = smov 0   ;;  %s1571_s21 = smov 0  }
   0x6 LB: > { %s1586_s22 = sadd.s32 4294967295, %s1514_s21   ;;  %s1040_s23 = sadd.s32 4294967294, %s1514_s21   ;;  %s1514_s21 = sphi %s1571_s21, %s1783_s21   ;;  %s1510_s20 = sphi %s1569_s20, %s1782_s20   ;;  %s1506_s19 = sphi %s1567_s19, %s1781_s19   ;;  %s1502_s18 = sphi %s1565_s18, %s1780_s18  }
   0x7   : > { %p42_p0 = scmp.ne.s32.totalorder %s1506_s19, %s1502_s18  ;;  %p43_p1 = scmp.eq.s32.totalorder %s1586_s22, 0 }
   0x8   : > { %p150_p2 = scmp.eq.s32.totalorder %s1586_s22, 1  ;;  %p156_p3 = scmp.eq.s32.totalorder %s1040_s23, 1 }
   0x9   : > { %p1595_p4 = por %p43_p1, %p42_p0  ;;  %p1041_p5 = scmp.ge.s32.totalorder %s1514_s21, 1 }
   0xa   : > { %p1600_p6 = por %p156_p3, %p42_p0  ;;  %p163_p7 = scmp.lt.s32.totalorder %s1514_s21, 3 }
   0xb   : > { %s174_s28 = sshll.u32 %s1767_s1, 4  ;;  %s1516_s30 = smov [#allocation5]   ;;  %s175_s28 = int_to_ptr.hbm [resolvable:$true] %s174_s28 }
   0xc   : > { %p1608_p8 = pnand %p1041_p5, %p163_p7  ;;  %s176_s6 = sshll.u32 %s1516_s30, 4  ;;  %s177_s6 = int_to_ptr.vmem [resolvable:$true] %s176_s6 }
   0xd   : > { %s191_s9 = sshll.u32 %s1769_s3, 4  ;;  %s1772_s10 = smov 128   ;;  %s192_s9 = int_to_ptr.hbm [resolvable:$true] %s191_s9 }
   0xe   : > { %p1280_p9 = pneg %p1608_p8  ;;  %s1518_s11 = smov 8  }
   0xf   : > { %s1519_s12 = smov [#allocation7]   ;;  %s1627_s14 = sadd.s32 1, %s1514_s21  }
  0x10   : > { %p1281_p10 = pnand %p1280_p9, %p43_p1  ;;  %s193_s13 = sshll.u32 %s1519_s12, 4  ;;  %s194_s13 = int_to_ptr.vmem [resolvable:$true] %s193_s13 }
  0x11   : > { %s29_s15 = sadd.s32 1, %s1510_s20  ;;  %s26_s16 = ssub.s32 %s1514_s21, %s1627_s14 }
  0x12   : > { %1283 = dma.hbm_to_vmem [thread:$0]  (!%p1281_p10), %s175_s28, 512, %s177_s6, [#allocation6], %s1772_s10, %s1772_s10, %s1518_s11  }
  0x13   : > { %1286 = dma.hbm_to_vmem [thread:$0]  (!%p1281_p10), %s192_s9, 512, %s194_s13, [#allocation6], %s1772_s10, %s1772_s10, %s1518_s11  }
  0x14   : > { %p36_p12 = scmp.ne.s32.totalorder %s1510_s20, %s1506_s19  ;;  %p27_p13 = scmp.eq.s32.totalorder %s26_s16, 0 }
  0x15   : > { %p37_p0 = scmp.eq.s32.totalorder %s1514_s21, 0  ;;  %p1297_p5 = scmp.lt.s32.totalorder %s1514_s21, 2 }
  0x16   : > { %p1637_p3 = por %p150_p2, %p36_p12  ;;  %s210_s26 = sand.u32 1, %s1510_s20  }
  0x17   : > { %s1643_s23 = scalar_select %p27_p13, %s1510_s20, %s29_s15  }
  0x18   : > { %p38_p7 = por %p37_p0, %p36_p12  ;;  %s1045_s27 = sshll.u32 %s210_s26, 4 }
  0x19   : > { %s1090_s28 = sshll.u32 %s1514_s21, 4  ;;  %s214_s8 = scalar_lea.vmem [#allocation2], %s1045_s27 }
  0x1a   : > { %s219_s7 = scalar_lea.hbm %s1766_s0, %s1090_s28  ;;  %s222_s9 = sshll.u32 %s214_s8, 4  ;;  %s223_s9 = int_to_ptr.vmem [resolvable:$true] %s222_s9 }
  0x1b   : > { %s220_s12 = sshll.u32 %s219_s7, 4  ;;  %p1650_p2 = pnand %p1297_p5, %p38_p7  ;;  %s221_s12 = int_to_ptr.hbm [resolvable:$true] %s220_s12 }
  0x1c   : > { %s211_s15 = scalar_lea.sflag [#allocation3], %s210_s26  ;;  %s1414_s16 = sshra.s32 %s221_s12, 4  ;;  %s1415_s16 = int_to_ptr.hbm [resolvable:$true] %s1414_s16 }
  0x1d   : > { %s1416_s10 = scalar_lea.hbm %s1415_s16, 16  ;;  %p1418_p10 = pneg %p1650_p2 }
  0x1e   : > { %p1417_p9 = scmp.ne.s32.totalorder %s1415_s16, %s1416_s10  ;;  %s1421_s30 = scalar_lea.hbm %s1766_s0, 32 }
  0x1f   : > { %p1422_p0 = scmp.lt.s32.totalorder %s1415_s16, %s1766_s0  ;;  %p1423_p5 = scmp.lt.s32.totalorder %s1421_s30, %s1416_s10 }
  0x20   : > { %p1419_p12 = pnand %p1418_p10, %p1417_p9 }
  0x21   : > { %p1424_p7 = por %p1423_p5, %p1422_p0 }
  0x22   : > { %p1420_p13 = pneg %p1419_p12 }
  0x24   : > { %p1425_p11 = pnand %p1424_p7, %p1420_p13 }
  0x26   : > { %1428 = shalt.err (!%p1425_p11)
}
  0x27   : > { %s1778_s26 = smov 128   ;;  %234 = sbr.rel (%p1608_p8) target bundleno = 931 (0x3a3), region = 40 }
  0x28   : > { %1290 = dma.hbm_to_vmem [thread:$0]  (!%p1650_p2), %s221_s12, 256, %s223_s9, %s211_s15, %s1778_s26, %s1778_s26, %s1518_s11  }
  0x29   : > { %s1670_s8 = sand.u32 (!%p1608_p8), 1, %s1506_s19  }
  0x2a   : > { %s1049_s10 = sshll.u32 (!%p1608_p8), %s1670_s8, 4  ;;  %s237_s16 = scalar_lea.sflag (!%p1608_p8), [#allocation3], %s1670_s8 }
  0x2b   : > { %s240_s28 = scalar_lea.vmem (!%p1608_p8), [#allocation2], %s1049_s10 }
  0x2c   : > { %1489 = dma.done.wait (%p1595_p4), %s237_s16, 256  }
  0x2d   : > { %1491 = vsyncadd (%p1595_p4), %s237_s16, 4294967040 }
  0x2e   : > { %1493 = dma.done.wait (%p43_p1), [#allocation6], 1024  }
  0x2f   : > { %1495 = vsyncadd (%p43_p1), [#allocation6], 4294966272  ;;  %v295_v0 = vld [vmem:[#allocation5 + $0x18] sm:$0xff]  ;;  %v294_v1 = vld [vmem:[#allocation5 + $0x10] sm:$0xff]  ;;  %vm300_vm2 = vcmask 261120   ;;  %s1520_s11 = smov 96  }
  0x30   : > { %319 = vmatpush.msra.mxu0 %v295_v0  ;;  %v280_v2 = vld [vmem:[%s240_s28] sm:$0xff]  ;;  %v281_v3 = vld [vmem:[%s240_s28 + $0x8] sm:$0xff]  ;;  %s1521_s9 = smov 120   ;;  %s1522_s12 = smov 72   ;;  %vm343_vm5 = vcmask 64512  }
  0x31   : > { %v293_v4 = vld [vmem:[#allocation5 + $0x8] sm:$0xff]  ;;  %v282_v5 = vmul.f32 2.0, %v280_v2  ;;  %v283_v6 = vmul.f32 2.0, %v281_v3  ;;  %v292_v7 = vld [vmem:[#allocation5] sm:$0xff]  ;;  %s1523_s13 = smov 104   ;;  %s1524_s15 = smov 48  }
  0x32   : > { %320 = vmatpush.msra.mxu0 %v294_v1  ;;  %v1352_v26 = vld [vmem:[%s1768_s2] ss:$0 sm:$0xff]  ;;  %s1525_s27 = smov 80   ;;  %s1526_s30 = smov 56  }
  0x33   : > { %v1094_v8 = vcvt.f32.s32 %v282_v5  ;;  %v1092_v9 = vand.u32 2147483647, %v282_v5  ;;  %v1102_v10 = vcvt.f32.s32 %v283_v6  ;;  %v1097_v12 = vand.u32 2147483648, %v282_v5  ;;  %s1527_s6 = smov 112   ;;  %s1528_s7 = smov 64  }
  0x34   : > { %321 = vmatpush.msra.mxu0 %v293_v4  ;;  %v1100_v13 = vand.u32 2147483647, %v283_v6  ;;  %v1105_v15 = vand.u32 2147483648, %v283_v6  ;;  %s1529_s26 = smov 88   ;;  %s1530_s16 = smov 40  }
  0x35   : > { %v1095_v11 = vcvt.s32.f32 %v1094_v8  ;;  %v1103_v14 = vcvt.s32.f32 %v1102_v10  ;;  %vm1093_vm0 = vcmp.lt.f32.partialorder %v1092_v9, 8388608.0  ;;  %s1531_s28 = smov 8   ;;  %s1532_s24 = smov 16  }
  0x36   : > { %322 = vmatpush.msra.mxu0 %v292_v7  ;;  %vm1101_vm1 = vcmp.lt.f32.partialorder %v1100_v13, 8388608.0  ;;  %s1533_s29 = smov 24  }
  0x37   : > { %v1096_v16 = vand.u32 2147483647, %v1095_v11  ;;  %v1104_v17 = vand.u32 2147483647, %v1103_v14 }
  0x39   : > { %v1098_v18 = vor.u32 %v1097_v12, %v1096_v16  ;;  %v1106_v19 = vor.u32 %v1105_v15, %v1104_v17 }
  0x3b   : > { %v1099_v20 = vsel %vm1093_vm0, %v1098_v18, %v282_v5  ;;  %v1107_v22 = vsel %vm1101_vm1, %v1106_v19, %v283_v6 }
  0x3c   : > { %v1053_v21 = vclamps-f32 %v1099_v20, 2.1474836e+09  ;;  %v1054_v24 = vclamps-f32 %v1107_v22, 2.1474836e+09 }
  0x3e   : > { %v290_v23 = vmul.f32 0.5, %v1053_v21  ;;  %v291_v25 = vmul.f32 0.5, %v1054_v24 }
  0x40   : > { %1055 = vmatmul.msk.f32.vlgmr.msra.gmra.mxu0 %vm300_vm2, %v290_v23 }
  0x48   : > { %1056 = vmatmul.msk.f32.gmra.mxu0 %vm300_vm2, %v291_v25 }
  0xbd   : > { %v324_v27 = vpop.f32.mrf.mxu0 }
  0xbe   : > { %v325_v28 = vadd.f32 %v1352_v26, %v324_v27 }
  0xc0   : > { %v330_v29 = vmul.f32 2.0, %v325_v28 }
  0xc2   : > { %v1110_v30 = vcvt.f32.s32 %v330_v29  ;;  %v1108_v32 = vand.u32 2147483647, %v330_v29  ;;  %v1113_v35 = vand.u32 2147483648, %v330_v29 }
  0xc4   : > { %v1111_v31 = vcvt.s32.f32 %v1110_v30  ;;  %vm1109_vm3 = vcmp.lt.f32.partialorder %v1108_v32, 8388608.0 }
  0xc5   : > { %v327_v33 = vpop.f32.mrf.mxu0 }
  0xc6   : > { %v1112_v34 = vand.u32 2147483647, %v1111_v31  ;;  %v328_v36 = vadd.f32 %v1352_v26, %v327_v33 }
  0xc8   : > { %v1114_v37 = vor.u32 %v1113_v35, %v1112_v34  ;;  %v331_v38 = vmul.f32 2.0, %v328_v36 }
  0xca   : > { %v1115_v39 = vsel %vm1109_vm3, %v1114_v37, %v330_v29  ;;  %v1118_v40 = vcvt.f32.s32 %v331_v38  ;;  %v1116_v44 = vand.u32 2147483647, %v331_v38  ;;  %v1121_v46 = vand.u32 2147483648, %v331_v38 }
  0xcb   : > { %v334_v41 = vmax.f32 %v1115_v39, -32768.0 }
  0xcc   : > { %v1119_v42 = vcvt.s32.f32 %v1118_v40  ;;  %vm1117_vm4 = vcmp.lt.f32.partialorder %v1116_v44, 8388608.0 }
  0xcd   : > { %v336_v43 = vmin.f32 %v334_v41, 32767.0 }
  0xce   : > { %v1120_v45 = vand.u32 2147483647, %v1119_v42 }
  0xcf   : > { %v338_v47 = vmul.f32 0.5, %v336_v43 }
  0xd0   : > { %v1122_v48 = vor.u32 %v1121_v46, %v1120_v45 }
  0xd1   : > { %469 = vrot.lane.b32.xlu2 %v338_v47, %s1520_s11  ;;  %341 = vrot.lane.b32.xlu0 %v338_v47, %s1521_s9 }
  0xd2   : > { %v1123_v49 = vsel %vm1117_vm4, %v1122_v48, %v331_v38 }
  0xd3   : > { %v335_v50 = vmax.f32 %v1123_v49, -32768.0 }
  0xd5   : > { %v337_v51 = vmin.f32 %v335_v50, 32767.0 }
  0xd7   : > { %v339_v52 = vmul.f32 0.5, %v337_v51 }
  0xd9   : > { %497 = vrot.lane.b32.xlu1 %v339_v52, %s1520_s11  ;;  %597 = vrot.lane.b32.xlu2 %v338_v47, %s1522_s12 }
  0xda   : > { %369 = vrot.lane.b32.xlu0 %v339_v52, %s1521_s9 }
  0xe1   : > { %495 = vrot.lane.b32.xlu1 %v339_v52, %s1523_s13  ;;  %725 = vrot.lane.b32.xlu2 %v338_v47, %s1524_s15 }
  0xe2   : > { %467 = vrot.lane.b32.xlu0 %v338_v47, %s1523_s13  ;;  %s277_s13 = scalar_lea.vmem [#allocation8], %s1049_s10 }
  0xe9   : > { %595 = vrot.lane.b32.xlu1 %v338_v47, %s1525_s27  ;;  %623 = vrot.lane.b32.xlu2 %v339_v52, %s1525_s27 }
  0xea   : > { %723 = vrot.lane.b32.xlu0 %v338_v47, %s1526_s30 }
  0xf1   : > { %625 = vrot.lane.b32.xlu1 %v339_v52, %s1522_s12  ;;  %405 = vrot.lane.b32.xlu2 %v338_v47, %s1527_s6  ;;  %s1091_s12 = sshll.u32 %s1586_s22, 4  ;;  %s933_s22 = scalar_lea.sflag [#allocation4], %s1670_s8 }
  0xf2   : > { %753 = vrot.lane.b32.xlu0 %v339_v52, %s1524_s15 }
  0xf9   : > { %751 = vrot.lane.b32.xlu1 %v339_v52, %s1526_s30  ;;  %661 = vrot.lane.b32.xlu2 %v338_v47, %s1528_s7  ;;  %s944_s30 = scalar_lea.hbm %s1771_s5, %s1091_s12 }
  0xfa   : > { %431 = vrot.lane.b32.xlu0 %v339_v52, %s1527_s6  ;;  %s945_s6 = sshll.u32 %s277_s13, 4  ;;  %s946_s6 = int_to_ptr.vmem [resolvable:$true] %s945_s6 }
 0x101   : > { %533 = vrot.lane.b32.xlu1 %v338_v47, %s1529_s26  ;;  %687 = vrot.lane.b32.xlu2 %v339_v52, %s1528_s7  ;;  %s947_s7 = sshll.u32 %s944_s30, 4  ;;  %s948_s7 = int_to_ptr.hbm [resolvable:$true] %s947_s7 }
 0x102   : > { %559 = vrot.lane.b32.xlu0 %v339_v52, %s1529_s26  ;;  %s1458_s10 = sshra.s32 %s948_s7, 4  ;;  %s1459_s10 = int_to_ptr.hbm [resolvable:$true] %s1458_s10 }
 0x103   : > { %s1460_s26 = scalar_lea.hbm %s1459_s10, 16  ;;  %p1465_p11 = scmp.lt.s32.totalorder %s1459_s10, %s1771_s5 }
 0x104   : > { %p1461_p1 = scmp.ne.s32.totalorder %s1459_s10, %s1460_s26 }
 0x106   : > { %p1462_p4 = pnand %p1461_p1, %p1637_p3 }
 0x108   : > { %p1463_p8 = pneg %p1462_p4 }
 0x109   : > { %789 = vrot.lane.b32.xlu1 %v338_v47, %s1530_s16 }
 0x10a   : > { %815 = vrot.lane.b32.xlu0 %v339_v52, %s1530_s16 }
 0x12b   : > { %v470_v53 = vpop.permute.xlu2 %469 }
 0x133   : > { %v598_v54 = vpop.permute.xlu2 %597 }
 0x13b   : > { %v726_v55 = vpop.permute.xlu2 %725 }
 0x143   : > { %v624_v56 = vpop.permute.xlu2 %623  ;;  %v342_v57 = vpop.permute.xlu0 %341 }
 0x144   : > { %1057 = vmatpush.xpose.msk.msra.mxu1 %vm343_vm5, %v342_v57 }
 0x147   : > { %1058 = vmatmul.msk.f32.vlgmr.msra.gmra.mxu1 %vm343_vm5, %v338_v47 }
 0x148   : > { %1063 = vmatpush.xpose.msk.msrb.mxu1 %vm343_vm5, %v470_v53 }
 0x14b   : > { %v498_v58 = vpop.permute.xlu1 %497  ;;  %v406_v59 = vpop.permute.xlu2 %405 }
 0x14c   : > { %v370_v60 = vpop.permute.xlu0 %369  ;;  %426 = vmatpush.msra.mxu3 %v406_v59  ;;  %1065 = vmatpush.xpose.msk.msra.mxu2 %vm343_vm5, %v498_v58 }
 0x14d   : > { %1059 = vmatpush.xpose.msk.msrb.mxu0 %vm343_vm5, %v370_v60 }
 0x150   : > { %1069 = vmatpush.xpose.msk.msrb.mxu2 %vm343_vm5, %v598_v54  ;;  %1060 = vmatmul.msk.f32.vlgmr.msrb.gmra.mxu0 %vm343_vm5, %v339_v52 }
 0x153   : > { %v496_v61 = vpop.permute.xlu1 %495  ;;  %v662_v3 = vpop.permute.xlu2 %661 }
 0x154   : > { %v468_v62 = vpop.permute.xlu0 %467  ;;  %1066 = vmatmul.msk.f32.vlgmr.msra.gmra.mxu2 %vm343_vm5, %v496_v61 }
 0x155   : > { %1064 = vmatmul.msk.f32.vlgmr.msrb.gmra.mxu1 %vm343_vm5, %v468_v62  ;;  %1075 = vmatpush.xpose.msk.msra.mxu2 %vm343_vm5, %v726_v55 }
 0x15b   : > { %v596_v63 = vpop.permute.xlu1 %595  ;;  %v688_v7 = vpop.permute.xlu2 %687 }
 0x15c   : > { %v724_v0 = vpop.permute.xlu0 %723  ;;  %1070 = vmatmul.msk.f32.vlgmr.msrb.gmra.mxu2 %vm343_vm5, %v596_v63 }
 0x163   : > { %v626_v1 = vpop.permute.xlu1 %625 }
 0x164   : > { %v754_v2 = vpop.permute.xlu0 %753  ;;  %1071 = vmatpush.xpose.msk.msra.mxu0 %vm343_vm5, %v626_v1  ;;  %1076 = vmatmul.msk.f32.vlgmr.msra.gmra.mxu2 %vm343_vm5, %v724_v0 }
 0x167   : > { %1072 = vmatmul.msk.f32.vlgmr.msra.gmra.mxu0 %vm343_vm5, %v624_v56 }
 0x168   : > { %1077 = vmatpush.xpose.msk.msrb.mxu0 %vm343_vm5, %v754_v2 }
 0x16b   : > { %v752_v5 = vpop.permute.xlu1 %751 }
 0x16c   : > { %v432_v4 = vpop.permute.xlu0 %431 }
 0x16d   : > { %452 = vmatpush.msrb.mxu3 %v432_v4 }
 0x16f   : > { %1078 = vmatmul.msk.f32.vlgmr.msrb.gmra.mxu0 %vm343_vm5, %v752_v5 }
 0x173   : > { %v534_v30 = vpop.permute.xlu1 %533 }
 0x174   : > { %v560_v6 = vpop.permute.xlu0 %559 }
 0x175   : > { %580 = vmatpush.msra.mxu1 %v560_v6 }
 0x177   : > { %708 = vmatpush.msrb.mxu1 %v688_v7 }
 0x17b   : > { %v790_v1 = vpop.permute.xlu1 %789 }
 0x17c   : > { %v816_v7 = vpop.permute.xlu0 %815 }
 0x1c4   : > { %v365_v8 = vpop.f32.mrf.mxu1 }
 0x1c5   : > { %v395_v9 = vmul.f32 2.0, %v365_v8 }
 0x1c7   : > { %v1126_v10 = vcvt.f32.s32 %v395_v9  ;;  %v1124_v12 = vand.u32 2147483647, %v395_v9  ;;  %v1129_v14 = vand.u32 2147483648, %v395_v9 }
 0x1c9   : > { %v1127_v11 = vcvt.s32.f32 %v1126_v10  ;;  %vm1125_vm6 = vcmp.lt.f32.partialorder %v1124_v12, 8388608.0 }
 0x1cb   : > { %v1128_v13 = vand.u32 2147483647, %v1127_v11 }
 0x1cd   : > { %v392_v15 = vpop.f32.mrf.mxu0  ;;  %v1130_v16 = vor.u32 %v1129_v14, %v1128_v13 }
 0x1ce   : > { %v396_v17 = vmul.f32 2.0, %v392_v15 }
 0x1cf   : > { %v1131_v18 = vsel %vm1125_vm6, %v1130_v16, %v395_v9 }
 0x1d0   : > { %v1134_v19 = vcvt.f32.s32 %v396_v17  ;;  %v399_v20 = vmax.f32 %v1131_v18, -32768.0  ;;  %v1132_v24 = vand.u32 2147483647, %v396_v17  ;;  %v1137_v27 = vand.u32 2147483648, %v396_v17 }
 0x1d2   : > { %v1135_v21 = vcvt.s32.f32 %v1134_v19  ;;  %v492_v22 = vpop.f32.mrf.mxu1  ;;  %v401_v23 = vmin.f32 %v399_v20, 32767.0  ;;  %vm1133_vm7 = vcmp.lt.f32.partialorder %v1132_v24, 8388608.0 }
 0x1d3   : > { %v523_v25 = vmul.f32 2.0, %v492_v22 }
 0x1d4   : > { %v1136_v26 = vand.u32 2147483647, %v1135_v21  ;;  %v403_v28 = vmul.f32 0.5, %v401_v23 }
 0x1d5   : > { %v1158_v29 = vcvt.f32.s32 %v523_v25  ;;  %v1156_v35 = vand.u32 2147483647, %v523_v25  ;;  %v1161_v38 = vand.u32 2147483648, %v523_v25 }
 0x1d6   : > { %v1138_v31 = vor.u32 %v1137_v27, %v1136_v26  ;;  %1061 = vmatmul.msk.f32.vlgmr.msra.gmra.mxu3 %vm343_vm5, %v403_v28 }
 0x1d7   : > { %v1159_v32 = vcvt.s32.f32 %v1158_v29  ;;  %554 = vmatpush.msra.mxu3 %v534_v30  ;;  %v520_v33 = vpop.f32.mrf.mxu2  ;;  %vm1157_vm8 = vcmp.lt.f32.partialorder %v1156_v35, 8388608.0 }
 0x1d8   : > { %v1139_v34 = vsel %vm1133_vm7, %v1138_v31, %v396_v17  ;;  %v524_v36 = vmul.f32 2.0, %v520_v33 }
 0x1d9   : > { %v1160_v37 = vand.u32 2147483647, %v1159_v32  ;;  %v400_v39 = vmax.f32 %v1139_v34, -32768.0 }
 0x1da   : > { %v1166_v40 = vcvt.f32.s32 %v524_v36  ;;  %v1164_v45 = vand.u32 2147483647, %v524_v36  ;;  %v1169_v49 = vand.u32 2147483648, %v524_v36 }
 0x1db   : > { %v1162_v41 = vor.u32 %v1161_v38, %v1160_v37  ;;  %v402_v42 = vmin.f32 %v400_v39, 32767.0 }
 0x1dc   : > { %v1167_v43 = vcvt.s32.f32 %v1166_v40  ;;  %vm1165_vm9 = vcmp.lt.f32.partialorder %v1164_v45, 8388608.0 }
 0x1dd   : > { %v1163_v44 = vsel %vm1157_vm8, %v1162_v41, %v523_v25  ;;  %v404_v46 = vmul.f32 0.5, %v402_v42  ;;  %vm877_vm8 = vcmask 130048  }
 0x1de   : > { %v527_v47 = vmax.f32 %v1163_v44, -32768.0  ;;  %v1168_v48 = vand.u32 2147483647, %v1167_v43 }
 0x1df   : > { %1062 = vmatmul.msk.f32.vlgmr.msrb.gmra.mxu3 %vm343_vm5, %v404_v46  ;;  %v620_v50 = vpop.f32.mrf.mxu2 }
 0x1e0   : > { %v1170_v51 = vor.u32 %v1169_v49, %v1168_v48  ;;  %682 = vmatpush.msrb.mxu3 %v662_v3  ;;  %v651_v52 = vmul.f32 2.0, %v620_v50  ;;  %v529_v53 = vmin.f32 %v527_v47, 32767.0 }
 0x1e2   : > { %v1171_v54 = vsel %vm1165_vm9, %v1170_v51, %v524_v36  ;;  %v1190_v55 = vcvt.f32.s32 %v651_v52  ;;  %v531_v59 = vmul.f32 0.5, %v529_v53  ;;  %v1188_v61 = vand.u32 2147483647, %v651_v52 }
 0x1e3   : > { %v528_v56 = vmax.f32 %v1171_v54, -32768.0  ;;  %v1193_v0 = vand.u32 2147483648, %v651_v52  ;;  %vm880_vm9 = vcmask 195584  }
 0x1e4   : > { %v1191_v57 = vcvt.s32.f32 %v1190_v55  ;;  %v648_v58 = vpop.f32.mrf.mxu0  ;;  %vm1189_vm10 = vcmp.lt.f32.partialorder %v1188_v61, 8388608.0 }
 0x1e5   : > { %v530_v60 = vmin.f32 %v528_v56, 32767.0  ;;  %v652_v62 = vmul.f32 2.0, %v648_v58 }
 0x1e6   : > { %v1192_v63 = vand.u32 2147483647, %v1191_v57 }
 0x1e7   : > { %v532_v2 = vmul.f32 0.5, %v530_v60  ;;  %v1198_v4 = vcvt.f32.s32 %v652_v62  ;;  %1067 = vmatmul.msk.f32.vlgmr.msra.gmra.mxu3 %vm343_vm5, %v531_v59  ;;  %v748_v3 = vpop.f32.mrf.mxu2  ;;  %v1196_v10 = vand.u32 2147483647, %v652_v62  ;;  %v1201_v14 = vand.u32 2147483648, %v652_v62 }
 0x1e8   : > { %v1194_v5 = vor.u32 %v1193_v0, %v1192_v63  ;;  %810 = vmatpush.msra.mxu3 %v790_v1  ;;  %v779_v6 = vmul.f32 2.0, %v748_v3 }
 0x1e9   : > { %v1199_v8 = vcvt.s32.f32 %v1198_v4  ;;  %1068 = vmatmul.msk.f32.vlgmr.msra.gmra.mxu1 %vm343_vm5, %v532_v2  ;;  %vm1197_vm11 = vcmp.lt.f32.partialorder %v1196_v10, 8388608.0 }
 0x1ea   : > { %v1195_v9 = vsel %vm1189_vm10, %v1194_v5, %v651_v52  ;;  %v1222_v11 = vcvt.f32.s32 %v779_v6  ;;  %836 = vmatpush.msra.mxu1 %v816_v7  ;;  %v1220_v19 = vand.u32 2147483647, %v779_v6  ;;  %v1225_v22 = vand.u32 2147483648, %v779_v6 }
 0x1eb   : > { %v655_v12 = vmax.f32 %v1195_v9, -32768.0  ;;  %v1200_v13 = vand.u32 2147483647, %v1199_v8 }
 0x1ec   : > { %v1223_v15 = vcvt.s32.f32 %v1222_v11  ;;  %v776_v16 = vpop.f32.mrf.mxu0  ;;  %vm1221_vm12 = vcmp.lt.f32.partialorder %v1220_v19, 8388608.0 }
 0x1ed   : > { %v657_v17 = vmin.f32 %v655_v12, 32767.0  ;;  %v1202_v18 = vor.u32 %v1201_v14, %v1200_v13  ;;  %v780_v20 = vmul.f32 2.0, %v776_v16 }
 0x1ee   : > { %v1224_v21 = vand.u32 2147483647, %v1223_v15 }
 0x1ef   : > { %v659_v23 = vmul.f32 0.5, %v657_v17  ;;  %v1203_v24 = vsel %vm1197_vm11, %v1202_v18, %v652_v62  ;;  %v1230_v25 = vcvt.f32.s32 %v780_v20  ;;  %v1228_v31 = vand.u32 2147483647, %v780_v20 }
 0x1f0   : > { %v656_v26 = vmax.f32 %v1203_v24, -32768.0  ;;  %v1226_v27 = vor.u32 %v1225_v22, %v1224_v21  ;;  %v1233_v34 = vand.u32 2147483648, %v780_v20 }
 0x1f1   : > { %v1231_v28 = vcvt.s32.f32 %v1230_v25  ;;  %1073 = vmatmul.msk.f32.vlgmr.msrb.gmra.mxu3 %vm343_vm5, %v659_v23  ;;  %vm1229_vm13 = vcmp.lt.f32.partialorder %v1228_v31, 8388608.0 }
 0x1f2   : > { %v658_v29 = vmin.f32 %v656_v26, 32767.0  ;;  %v1227_v30 = vsel %vm1221_vm12, %v1226_v27, %v779_v6 }
 0x1f3   : > { %v783_v32 = vmax.f32 %v1227_v30, -32768.0  ;;  %v1232_v33 = vand.u32 2147483647, %v1231_v28 }
 0x1f4   : > { %v660_v35 = vmul.f32 0.5, %v658_v29 }
 0x1f5   : > { %v785_v36 = vmin.f32 %v783_v32, 32767.0  ;;  %v1234_v37 = vor.u32 %v1233_v34, %v1232_v33 }
 0x1f6   : > { %1074 = vmatmul.msk.f32.vlgmr.msrb.gmra.mxu1 %vm343_vm5, %v660_v35 }
 0x1f7   : > { %v787_v38 = vmul.f32 0.5, %v785_v36  ;;  %v1235_v39 = vsel %vm1229_vm13, %v1234_v37, %v780_v20 }
 0x1f8   : > { %v784_v40 = vmax.f32 %v1235_v39, -32768.0 }
 0x1f9   : > { %1079 = vmatmul.msk.f32.vlgmr.msra.gmra.mxu3 %vm343_vm5, %v787_v38 }
 0x1fa   : > { %v786_v41 = vmin.f32 %v784_v40, 32767.0 }
 0x1fc   : > { %v788_v42 = vmul.f32 0.5, %v786_v41 }
 0x1fe   : > { %1080 = vmatmul.msk.f32.vlgmr.msra.gmra.mxu1 %vm343_vm5, %v788_v42 }
 0x259   : > { %v1713_v43 = vpop.f32.mrf.mxu3 }
 0x262   : > { %v1715_v44 = vpop.f32.mrf.mxu3 }
 0x266   : > { %v582_v45 = vpop.f32.mrf.mxu1 }
 0x267   : > { %v586_v46 = vmul.f32 2.0, %v582_v45 }
 0x269   : > { %v1182_v47 = vcvt.f32.s32 %v586_v46  ;;  %v1185_v54 = vand.u32 2147483648, %v586_v46  ;;  %v1180_v58 = vand.u32 2147483647, %v586_v46 }
 0x26a   : > { %v556_v48 = vpop.f32.mrf.mxu3 }
 0x26b   : > { %v1183_v49 = vcvt.s32.f32 %v1182_v47  ;;  %v585_v50 = vmul.f32 2.0, %v556_v48  ;;  %vm1181_vm15 = vcmp.lt.f32.partialorder %v1180_v58, 8388608.0  ;;  %v457_v58 = vmul.f32 2.0, %v1713_v43 }
 0x26d   : > { %v1174_v51 = vcvt.f32.s32 %v585_v50  ;;  %v1184_v52 = vand.u32 2147483647, %v1183_v49  ;;  %v1172_v55 = vand.u32 2147483647, %v585_v50  ;;  %v1177_v57 = vand.u32 2147483648, %v585_v50 }
 0x26f   : > { %v1175_v53 = vcvt.s32.f32 %v1174_v51  ;;  %v1186_v59 = vor.u32 %v1185_v54, %v1184_v52  ;;  %vm1173_vm14 = vcmp.lt.f32.partialorder %v1172_v55, 8388608.0  ;;  %v886_v55 = vld [vmem:[#allocation7 + $0x18] sm:$0xff] }
 0x270   : > { %909 = vmatpush.msrb.mxu2 %v886_v55 }
 0x271   : > { %v1176_v56 = vand.u32 2147483647, %v1175_v53  ;;  %v1187_v3 = vsel %vm1181_vm15, %v1186_v59, %v586_v46  ;;  %v1142_v59 = vcvt.f32.s32 %v457_v58 }
 0x272   : > { %v590_v9 = vmax.f32 %v1187_v3, -32768.0 }
 0x273   : > { %v710_v60 = vpop.f32.mrf.mxu1  ;;  %v1178_v61 = vor.u32 %v1177_v57, %v1176_v56  ;;  %v885_v56 = vld [vmem:[#allocation7 + $0x10] sm:$0xff]  ;;  %v884_v57 = vld [vmem:[#allocation7 + $0x8] sm:$0xff] }
 0x274   : > { %v714_v62 = vmul.f32 2.0, %v710_v60  ;;  %v684_v63 = vpop.f32.mrf.mxu3  ;;  %v592_v21 = vmin.f32 %v590_v9, 32767.0  ;;  %910 = vmatpush.msrb.mxu2 %v885_v56  ;;  %v883_v60 = vld [vmem:[#allocation7] sm:$0xff] }
 0x275   : > { %v713_v0 = vmul.f32 2.0, %v684_v63  ;;  %v1179_v1 = vsel %vm1173_vm14, %v1178_v61, %v585_v50  ;;  %v1143_v61 = vcvt.s32.f32 %v1142_v59 }
 0x276   : > { %v1214_v2 = vcvt.f32.s32 %v714_v62  ;;  %v589_v4 = vmax.f32 %v1179_v1, -32768.0  ;;  %v1217_v13 = vand.u32 2147483648, %v714_v62  ;;  %v1212_v19 = vand.u32 2147483647, %v714_v62  ;;  %911 = vmatpush.msrb.mxu2 %v884_v57 }
 0x277   : > { %v1206_v5 = vcvt.f32.s32 %v713_v0  ;;  %v1204_v12 = vand.u32 2147483647, %v713_v0  ;;  %v1209_v15 = vand.u32 2147483648, %v713_v0  ;;  %v594_v30 = vmul.f32 0.5, %v592_v21 }
 0x278   : > { %v1215_v6 = vcvt.s32.f32 %v1214_v2  ;;  %v591_v7 = vmin.f32 %v589_v4, 32767.0  ;;  %vm1213_vm1 = vcmp.lt.f32.partialorder %v1212_v19, 8388608.0  ;;  %912 = vmatpush.msrb.mxu2 %v883_v60  ;;  %v1144_v63 = vand.u32 2147483647, %v1143_v61 }
 0x279   : > { %v1207_v8 = vcvt.s32.f32 %v1206_v5  ;;  %vm1205_vm0 = vcmp.lt.f32.partialorder %v1204_v12, 8388608.0  ;;  %v1145_v1 = vand.u32 2147483648, %v457_v58  ;;  %v1140_v2 = vand.u32 2147483647, %v457_v58 }
 0x27a   : > { %v1216_v10 = vand.u32 2147483647, %v1215_v6  ;;  %v593_v11 = vmul.f32 0.5, %v591_v7 }
 0x27b   : > { %v1208_v14 = vand.u32 2147483647, %v1207_v8  ;;  %v838_v16 = vpop.f32.mrf.mxu1  ;;  %v1146_v4 = vor.u32 %v1145_v1, %v1144_v63  ;;  %vm1141_vm6 = vcmp.lt.f32.partialorder %v1140_v2, 8388608.0 }
 0x27c   : > { %853 = vrot.lane.b32.xlu1 %v593_v11, %s1531_s28  ;;  %v842_v17 = vmul.f32 2.0, %v838_v16  ;;  %v812_v18 = vpop.f32.mrf.mxu3  ;;  %v1218_v23 = vor.u32 %v1217_v13, %v1216_v10 }
 0x27d   : > { %v841_v20 = vmul.f32 2.0, %v812_v18  ;;  %v1210_v22 = vor.u32 %v1209_v15, %v1208_v14  ;;  %v1147_v6 = vsel %vm1141_vm6, %v1146_v4, %v457_v58 }
 0x27e   : > { %v1246_v24 = vcvt.f32.s32 %v842_v17  ;;  %v1219_v31 = vsel %vm1213_vm1, %v1218_v23, %v714_v62  ;;  %v1249_v35 = vand.u32 2147483648, %v842_v17  ;;  %v1244_v38 = vand.u32 2147483647, %v842_v17 }
 0x27f   : > { %v1238_v25 = vcvt.f32.s32 %v841_v20  ;;  %v1211_v26 = vsel %vm1205_vm0, %v1210_v22, %v713_v0  ;;  %v1236_v33 = vand.u32 2147483647, %v841_v20  ;;  %v1241_v37 = vand.u32 2147483648, %v841_v20 }
 0x280   : > { %v1247_v27 = vcvt.s32.f32 %v1246_v24  ;;  %v717_v28 = vmax.f32 %v1211_v26, -32768.0  ;;  %v718_v40 = vmax.f32 %v1219_v31, -32768.0  ;;  %vm1245_vm4 = vcmp.lt.f32.partialorder %v1244_v38, 8388608.0 }
 0x281   : > { %v1239_v29 = vcvt.s32.f32 %v1238_v25  ;;  %vm1237_vm3 = vcmp.lt.f32.partialorder %v1236_v33, 8388608.0  ;;  %v458_v62 = vmul.f32 2.0, %v1715_v44  ;;  %v461_v9 = vmax.f32 %v1147_v6, -32768.0 }
 0x282   : > { %v1248_v32 = vand.u32 2147483647, %v1247_v27  ;;  %v719_v34 = vmin.f32 %v717_v28, 32767.0  ;;  %v720_v47 = vmin.f32 %v718_v40, 32767.0 }
 0x283   : > { %v1240_v36 = vand.u32 2147483647, %v1239_v29  ;;  %v1150_v0 = vcvt.f32.s32 %v458_v62  ;;  %v1153_v7 = vand.u32 2147483648, %v458_v62  ;;  %v1148_v8 = vand.u32 2147483647, %v458_v62 }
 0x284   : > { %855 = vrot.lane.b32.xlu1 %v594_v30, %s1531_s28  ;;  %v721_v39 = vmul.f32 0.5, %v719_v34  ;;  %v1250_v42 = vor.u32 %v1249_v35, %v1248_v32  ;;  %v722_v51 = vmul.f32 0.5, %v720_v47  ;;  %v463_v10 = vmin.f32 %v461_v9, 32767.0  ;;  %v1353_v27 = vld [vmem:[%s1770_s4] ss:$0 sm:$0xff] }
 0x285   : > { %v1242_v41 = vor.u32 %v1241_v37, %v1240_v36  ;;  %v1151_v3 = vcvt.s32.f32 %v1150_v0  ;;  %vm1149_vm7 = vcmp.lt.f32.partialorder %v1148_v8, 8388608.0 }
 0x286   : > { %861 = vrot.lane.b32.xlu2 %v721_v39, %s1532_s24  ;;  %v1251_v48 = vsel %vm1245_vm4, %v1250_v42, %v842_v17  ;;  %v465_v13 = vmul.f32 0.5, %v463_v10 }
 0x287   : > { %v1243_v45 = vsel %vm1237_vm3, %v1242_v41, %v841_v20  ;;  %v846_v52 = vmax.f32 %v1251_v48, -32768.0  ;;  %v1152_v5 = vand.u32 2147483647, %v1151_v3 }
 0x288   : > { %v845_v46 = vmax.f32 %v1243_v45, -32768.0 }
 0x289   : > { %v848_v53 = vmin.f32 %v846_v52, 32767.0  ;;  %v1154_v43 = vor.u32 %v1153_v7, %v1152_v5 }
 0x28a   : > { %v847_v49 = vmin.f32 %v845_v46, 32767.0 }
 0x28b   : > { %v850_v54 = vmul.f32 0.5, %v848_v53  ;;  %v1155_v12 = vsel %vm1149_vm7, %v1154_v43, %v458_v62 }
 0x28c   : > { %v849_v50 = vmul.f32 0.5, %v847_v49  ;;  %v462_v14 = vmax.f32 %v1155_v12, -32768.0 }
 0x28e   : > { %869 = vrot.lane.b32.xlu0 %v849_v50, %s1533_s29  ;;  %863 = vrot.lane.b32.xlu2 %v722_v51, %s1532_s24  ;;  %v464_v16 = vmin.f32 %v462_v14, 32767.0 }
 0x290   : > { %v466_v21 = vmul.f32 0.5, %v464_v16 }
 0x296   : > { %871 = vrot.lane.b32.xlu0 %v850_v54, %s1533_s29  ;;  %s1464_s29 = scalar_lea.hbm %s1771_s5, 32 }
 0x297   : > { %p1466_p2 = scmp.lt.s32.totalorder %s1464_s29, %s1460_s26 }
 0x299   : > { %p1467_p9 = por %p1466_p2, %p1465_p11 }
 0x29b   : > { %p1468_p10 = pnand %p1467_p9, %p1463_p8 }
 0x2e0   : > { %v862_v44 = vpop.permute.xlu2 %861 }
 0x2e8   : > { %v864_v23 = vpop.permute.xlu2 %863 }
 0x2ee   : > { %v854_v11 = vpop.permute.xlu1 %853 }
 0x2ef   : > { %v875_v15 = vsel %vm343_vm5, %v465_v13, %v854_v11 }
 0x2f0   : > { %v878_v17 = vsel %vm877_vm8, %v875_v15, %v862_v44 }
 0x2f6   : > { %v856_v20 = vpop.permute.xlu1 %855 }
 0x2f7   : > { %v876_v22 = vsel %vm343_vm5, %v466_v21, %v856_v20 }
 0x2f8   : > { %v879_v25 = vsel %vm877_vm8, %v876_v22, %v864_v23 }
 0x300   : > { %v870_v18 = vpop.permute.xlu0 %869 }
 0x301   : > { %v881_v19 = vsel %vm880_vm9, %v878_v17, %v870_v18 }
 0x302   : > { %1081 = vmatmul.msk.f32.vlgmr.msrb.gmra.mxu2 %vm300_vm2, %v881_v19 }
 0x308   : > { %v872_v24 = vpop.permute.xlu0 %871 }
 0x309   : > { %v882_v26 = vsel %vm880_vm9, %v879_v25, %v872_v24 }
 0x30a   : > { %1082 = vmatmul.msk.f32.gmra.mxu2 %vm300_vm2, %v882_v26 }
 0x385   : > { %v914_v28 = vpop.f32.mrf.mxu2 }
 0x386   : > { %v915_v29 = vadd.f32 %v1353_v27, %v914_v28 }
 0x388   : > { %v920_v30 = vmul.f32 2.0, %v915_v29 }
 0x38a   : > { %v1254_v31 = vcvt.f32.s32 %v920_v30  ;;  %v1252_v33 = vand.u32 2147483647, %v920_v30  ;;  %v1257_v36 = vand.u32 2147483648, %v920_v30 }
 0x38c   : > { %v1255_v32 = vcvt.s32.f32 %v1254_v31  ;;  %vm1253_vm5 = vcmp.lt.f32.partialorder %v1252_v33, 8388608.0 }
 0x38d   : > { %v917_v34 = vpop.f32.mrf.mxu2 }
 0x38e   : > { %v1256_v35 = vand.u32 2147483647, %v1255_v32  ;;  %v918_v37 = vadd.f32 %v1353_v27, %v917_v34 }
 0x390   : > { %v1258_v38 = vor.u32 %v1257_v36, %v1256_v35  ;;  %v921_v39 = vmul.f32 2.0, %v918_v37 }
 0x392   : > { %v1259_v40 = vsel %vm1253_vm5, %v1258_v38, %v920_v30  ;;  %v1262_v41 = vcvt.f32.s32 %v921_v39  ;;  %v1260_v47 = vand.u32 2147483647, %v921_v39  ;;  %v1265_v49 = vand.u32 2147483648, %v921_v39 }
 0x393   : > { %v1083_v42 = vclamps-f32 %v1259_v40, 2.1474836e+09 }
 0x394   : > { %v1263_v45 = vcvt.s32.f32 %v1262_v41  ;;  %vm1261_vm10 = vcmp.lt.f32.partialorder %v1260_v47, 8388608.0 }
 0x395   : > { %v928_v46 = vmul.f32 0.5, %v1083_v42 }
 0x396   : > { %v1264_v48 = vand.u32 2147483647, %v1263_v45 }
 0x397   : > { %930 = vst.msk [vmem:[%s277_s13] sm:$0xff] %vm300_vm2, %v928_v46 }
 0x398   : > { %v1266_v50 = vor.u32 %v1265_v49, %v1264_v48 }
 0x39a   : > { %v1267_v51 = vsel %vm1261_vm10, %v1266_v50, %v921_v39 }
 0x39b   : > { %v1084_v52 = vclamps-f32 %v1267_v51, 2.1474836e+09 }
 0x39d   : > { %v929_v53 = vmul.f32 0.5, %v1084_v52 }
 0x39f   : > { %931 = vst.msk [vmem:[%s277_s13 + $0x8] sm:$0xff] %vm300_vm2, %v929_v53 }
 0x3a0   : > { %1471 = shalt.err (!%p1468_p10)
}
 0x3a1   : > { %s1534_s8 = smov 128  }
 0x3a2   : > { %1278 = dma.vmem_to_hbm [thread:$0]  (%p1637_p3), %s946_s6, 256, %s948_s7, %s933_s22, %s1534_s8, %s1534_s8, %s1531_s28  }
 0x3a3 PF: > { %s962_s12 = sand.u32 1, %s1502_s18   ;;  %p1779_p12 = scmp.ge.s32.totalorder %s1514_s21, 2 }
 0x3a4   : > { %s963_s13 = scalar_lea.sflag [#allocation4], %s962_s12 }
 0x3a5   : > { %p1292_p13 = pnand %p1779_p12, %p1600_p6 }
 0x3a7   : > { %p1293_p0 = pneg %p1292_p13 }
 0x3a9   : > { %1497 = dma.done.wait (%p1293_p0), %s963_s13, 256  }
 0x3aa   : > { %1499 = vsyncadd (%p1293_p0), %s963_s13, 4294967040  ;;  %p19_p5 = scmp.ge.s32.totalorder %s1627_s14, 4   ;;  %s1780_s18 = smov %s1506_s19 }
 0x3ab   : > { %s1781_s19 = smov %s1510_s20  ;;  %s1782_s20 = smov %s1643_s23 }
 0x3ac   : > { %s1783_s21 = smov %s1627_s14  ;;  %21 = sbr.rel (!%p19_p5) target bundleno = 6 (0x6), region = 93 }
 0x3b1   :  { %969 = vsyncpa [#allocation3], 1 }
 0x3b2   :  { %971 = vsyncpa [#allocation3 + $0x1], 1 }
 0x3b3   :  { %972 = vsyncpa [#allocation6], 1 }
 0x3b4   :  { %973 = vsyncpa [#allocation4], 1 }
 0x3b5   :  { %975 = vsyncpa [#allocation4 + $0x1], 1 }

</bundles_post_ra>
